<compile_context>
chip_gen: v5e
topology: v5e:2x2
jax: 0.10.0
libtpu: 0.0.40
codegen_flags: <defaults>
</compile_context>

<pallas_src>
import functools

import jax
import jax.numpy as jnp
from jax import lax
from jax.experimental import pallas as pl
from jax.experimental.pallas import tpu as pltpu

_BN_EPS = 1e-5
_LRELU_SLOPE = 0.2


def _round_up(x, m):
    return ((x + m - 1) // m) * m


# ---------------------------------------------------------------------------
# Fused direct-conv kernel: one (padded) output image row per grid step.
#   refs = (x_row_ref[0..kh_taps-1], w_ref, aff_ref, o_ref)
#     x_row_ref[kh] : (1, 1, Wp, Cin_eff)        bf16   padded input row ho+kh
#     w_ref         : (kh_taps*kw_taps, Cin_eff, Coutp) bf16  (VMEM resident)
#     aff_ref       : (2, Coutp) f32   row0 = scale, row1 = shift
#     o_ref         : (1, 1, Wp, Coutp)           bf16 or f32
# ---------------------------------------------------------------------------
def _conv_row_kernel(*refs, kh_taps, kw_taps, apply_act, neg_slope):
    x_refs = refs[:kh_taps]
    w_ref = refs[kh_taps]
    aff_ref = refs[kh_taps + 1]
    o_ref = refs[kh_taps + 2]
    wp = o_ref.shape[2]

    acc = None
    for kw in range(kw_taps):
        part = None
        for kh in range(kh_taps):
            xrow = x_refs[kh][0, 0]                       # (Wp, Cin_eff) bf16
            p = jnp.dot(xrow, w_ref[kh * kw_taps + kw],
                        preferred_element_type=jnp.float32)
            part = p if part is None else part + p
        if kw:
            # shifted[wo, :] = part[wo + kw, :]  -- the column tap, applied as
            # a tiny 0/1 matmul (only iota/compare/dot; rows beyond the valid
            # output width just become zeros and are sliced off outside).
            i = lax.broadcasted_iota(jnp.int32, (wp, wp), 0)
            j = lax.broadcasted_iota(jnp.int32, (wp, wp), 1)
            shift = (j - i == kw).astype(jnp.float32)
            part = jnp.dot(shift, part, preferred_element_type=jnp.float32)
        acc = part if acc is None else acc + part

    # Fused epilogue: conv bias OR folded inference BatchNorm, then LeakyReLU.
    z = acc * aff_ref[0:1, :] + aff_ref[1:2, :]
    if apply_act:
        z = jnp.where(z >= 0, z, neg_slope * z)
    o_ref[0, 0] = z.astype(o_ref.dtype)


# ---------------------------------------------------------------------------
# Wrapper: Conv2d(kernel=4, padding=1, stride in {1,2}) + affine (+ LeakyReLU)
# Input/output are NHWC; weights are PyTorch OIHW.
# ---------------------------------------------------------------------------
def conv4x4_affine_lrelu(x_nhwc, w_oihw, scale, shift, *, stride, apply_act,
                         out_dtype, neg_slope=_LRELU_SLOPE):
    N, H, W, Cin = x_nhwc.shape
    Cout, Cin_w, KH, KW = w_oihw.shape
    assert Cin_w == Cin and KH == 4 and KW == 4 and stride in (1, 2)

    H_out = (H + 2 - 4) // stride + 1
    W_out = (W + 2 - 4) // stride + 1
    Coutp = _round_up(Cout, 128)                 # lane-dense output channels

    x = x_nhwc.astype(jnp.bfloat16)              # bf16 MXU operands

    if stride == 1:
        # Direct conv: no im2col.  Kernel reads 4 padded rows per step.
        xin = jnp.pad(x, ((0, 0), (1, 1), (1, 1), (0, 0)))
        kh_taps, kw_taps = 4, 4
        cin_eff = Cin
        wp = W + 2                                    # row width incl. padding
        w_mat = jnp.transpose(w_oihw, (2, 3, 1, 0)).reshape(16, Cin, Cout)
    else:
        # Stride-2 stem (tiny Cin=3): cheap wrapper-side im2col; the kernel
        # degenerates to a single matmul per output row.
        xp = jnp.pad(x, ((0, 0), (1, 1), (1, 1), (0, 0)))
        taps = [xp[:, kh:kh + stride * (H_out - 1) + 1:stride,
                   kw:kw + stride * (W_out - 1) + 1:stride, :]
                for kh in range(4) for kw in range(4)]
        xin = jnp.concatenate(taps, axis=-1)          # (N, Ho, Wo, 16*Cin)
        kh_taps, kw_taps = 1, 1
        cin_eff = 16 * Cin
        wp = W_out
        w_mat = jnp.transpose(w_oihw, (2, 3, 1, 0)).reshape(1, 16 * Cin, Cout)

    w_mat = w_mat.astype(jnp.bfloat16)
    if Coutp != Cout:
        w_mat = jnp.pad(w_mat, ((0, 0), (0, 0), (0, Coutp - Cout)))
    aff = jnp.stack(
        [jnp.pad(scale.astype(jnp.float32), (0, Coutp - Cout)),
         jnp.pad(shift.astype(jnp.float32), (0, Coutp - Cout))], axis=0)

    def x_spec(kh):
        return pl.BlockSpec((1, 1, wp, cin_eff),
                            lambda n, h, kh=kh: (n, h + kh, 0, 0))

    in_specs = ([x_spec(kh) for kh in range(kh_taps)] + [
        # Full-array, constant-index blocks -> fetched once, VMEM resident.
        pl.BlockSpec((kh_taps * kw_taps, cin_eff, Coutp), lambda n, h: (0, 0, 0)),
        pl.BlockSpec((2, Coutp), lambda n, h: (0, 0)),
    ])
    out_spec = pl.BlockSpec((1, 1, wp, Coutp), lambda n, h: (n, h, 0, 0))

    kernel = functools.partial(_conv_row_kernel, kh_taps=kh_taps,
                               kw_taps=kw_taps, apply_act=apply_act,
                               neg_slope=neg_slope)

    flops = 2 * N * H_out * wp * (kh_taps * kw_taps * cin_eff) * Coutp
    bytes_accessed = (kh_taps * xin.size * 2 + w_mat.size * 2 + aff.size * 4
                      + N * H_out * wp * Coutp * jnp.dtype(out_dtype).itemsize)

    out = pl.pallas_call(
        kernel,
        out_shape=jax.ShapeDtypeStruct((N, H_out, wp, Coutp), out_dtype),
        grid_spec=pltpu.PrefetchScalarGridSpec(
            num_scalar_prefetch=0,
            grid=(N, H_out),
            in_specs=in_specs,
            out_specs=out_spec,
        ),
        compiler_params=pltpu.CompilerParams(
            dimension_semantics=("parallel", "parallel"),
            vmem_limit_bytes=48 * 1024 * 1024),
        cost_estimate=pl.CostEstimate(flops=flops, transcendentals=0,
                                      bytes_accessed=bytes_accessed),
    )(*([xin] * kh_taps + [w_mat, aff]))

    return out[:, :, :W_out, :Cout]
    # TODO(synk): for C_out > ~512 add a C_out grid axis (outermost) so the
    # resident weight block and the per-step accumulator stay small.


# ---------------------------------------------------------------------------
# DiscriminatorPatchGAN: parameter construction + forward (all convs fused)
# ---------------------------------------------------------------------------
def init_discriminator_params(key, input_channel=3, conv_filters=64,
                              num_layers=3):
    keys = iter(jax.random.split(key, 64))
    nk = lambda: next(keys)

    def conv_w(k, c_out, c_in):
        std = 1.0 / jnp.sqrt(jnp.float32(c_in * 16))
        return jax.random.normal(k, (c_out, c_in, 4, 4), jnp.float32) * std

    def bn_block(c_in, c_out):
        return {
            'type': 'conv_bn', 'stride': 1, 'act': True,
            'w': conv_w(nk(), c_out, c_in),
            'gamma': 1.0 + 0.1 * jax.random.normal(nk(), (c_out,), jnp.float32),
            'beta': 0.1 * jax.random.normal(nk(), (c_out,), jnp.float32),
            'mean': 0.1 * jax.random.normal(nk(), (c_out,), jnp.float32),
            'var': jnp.abs(1.0 + 0.1 * jax.random.normal(nk(), (c_out,),
                                                         jnp.float32)),
        }

    params = [{  # Conv(input_channel -> conv_filters, k4 s2 p1, bias) + LReLU
        'type': 'conv', 'stride': 2, 'act': True,
        'w': conv_w(nk(), conv_filters, input_channel),
        'b': 0.1 * jax.random.normal(nk(), (conv_filters,), jnp.float32),
    }]
    fm = 1
    for n in range(1, num_layers):
        fm_prev, fm = fm, min(2 ** n, 8)
        params.append(bn_block(conv_filters * fm_prev, conv_filters * fm))
    fm_prev, fm = fm, min(2 ** num_layers, 8)
    params.append(bn_block(conv_filters * fm_prev, conv_filters * fm))
    params.append({  # Conv(conv_filters*fm -> 1, k4 s1 p1, bias), no act
        'type': 'conv', 'stride': 1, 'act': False,
        'w': conv_w(nk(), 1, conv_filters * fm),
        'b': 0.1 * jax.random.normal(nk(), (1,), jnp.float32),
    })
    return params


def discriminator_forward(params, x_nchw):
    # NCHW -> NHWC once at entry; activations stay NHWC (bf16) between layers.
    y = jnp.transpose(x_nchw, (0, 2, 3, 1))
    n_layers = len(params)
    for li, p in enumerate(params):
        c_out = p['w'].shape[0]
        if p['type'] == 'conv':
            scale = jnp.ones((c_out,), jnp.float32)
            shift = p['b']
        else:
            # TODO(synk): training-mode BatchNorm (batch statistics) is not
            # implemented; inference-mode running stats are folded here.
            scale = p['gamma'] * lax.rsqrt(p['var'] + _BN_EPS)
            shift = p['beta'] - p['mean'] * scale
        out_dtype = jnp.float32 if li == n_layers - 1 else jnp.bfloat16
        y = conv4x4_affine_lrelu(y, p['w'], scale, shift, stride=p['stride'],
                                 apply_act=p['act'], out_dtype=out_dtype)
    return jnp.transpose(y, (0, 3, 1, 2))                  # back to NCHW


# ---------------------------------------------------------------------------
# Pure-JAX reference (f32 XLA convs) for a correctness check
# ---------------------------------------------------------------------------
def _conv_ref(x, w, stride):
    return lax.conv_general_dilated(
        x, w, window_strides=(stride, stride), padding=((1, 1), (1, 1)),
        dimension_numbers=('NCHW', 'OIHW', 'NCHW'),
        precision=lax.Precision.HIGHEST)


def discriminator_forward_ref(params, x):
    y = x
    for p in params:
        y = _conv_ref(y, p['w'], p['stride'])
        if p['type'] == 'conv':
            y = y + p['b'][None, :, None, None]
        else:
            scale = p['gamma'] * lax.rsqrt(p['var'] + _BN_EPS)
            shift = p['beta'] - p['mean'] * scale
            y = y * scale[None, :, None, None] + shift[None, :, None, None]
        if p['act']:
            y = jnp.where(y >= 0, y, _LRELU_SLOPE * y)
    return y


if __name__ == "__main__":
    key = jax.random.PRNGKey(0)
    k_param, k_x = jax.random.split(key)

    # Small but faithful config: input_channel=3, conv_filters=64, num_layers=3
    params = init_discriminator_params(k_param, input_channel=3,
                                       conv_filters=64, num_layers=3)
    x = jax.random.normal(k_x, (2, 3, 16, 16), dtype=jnp.float32)

    y = jax.block_until_ready(discriminator_forward(params, x))
    y_ref = discriminator_forward_ref(params, x)
    assert y.shape == y_ref.shape == (2, 1, 4, 4), y.shape

    # bf16 MXU operands + bf16 intermediate activations (f32 accumulation)
    # -> compare with a global relative tolerance.
    max_err = float(jnp.max(jnp.abs(y - y_ref)))
    ref_mag = float(jnp.max(jnp.abs(y_ref))) + 1e-6
    assert max_err / ref_mag < 5e-2, f"mismatch: max_err={max_err}, ref={ref_mag}"

    print("KERNEL_OK")
</pallas_src>

<mosaic_0001>
module attributes {stable_mosaic.version = 11 : i64} {
  func.func @_conv_row_kernel(%arg0: i32, %arg1: i32, %arg2: memref<1x1x8x48xbf16, #tpu.memory_space<vmem>>, %arg3: memref<1x48x128xbf16, #tpu.memory_space<vmem>>, %arg4: memref<2x128xf32, #tpu.memory_space<vmem>>, %arg5: memref<1x1x8x128xbf16, #tpu.memory_space<vmem>>) attributes {dimension_semantics = [#tpu.dimension_semantics<parallel>, #tpu.dimension_semantics<parallel>], iteration_bounds = array<i64: 2, 8>, scalar_prefetch = 0 : i64, scratch_operands = 0 : i64, tpu.core_type = #tpu.core_type<tc>, window_params = [{transform_indices = @transform_0, window_bounds = array<i64: 1, 1, 8, 48>}, {pipeline_mode = #tpu.pipeline_mode<synchronous>, transform_indices = @transform_1, window_bounds = array<i64: 1, 48, 128>}, {pipeline_mode = #tpu.pipeline_mode<synchronous>, transform_indices = @transform_2, window_bounds = array<i64: 2, 128>}, {transform_indices = @transform_3, window_bounds = array<i64: 1, 1, 8, 128>}]} {
    %c0 = arith.constant 0 : index
    %c0_0 = arith.constant 0 : index
    %c0_1 = arith.constant 0 : index
    %c0_2 = arith.constant 0 : index
    %0 = vector.load %arg2[%c0, %c0_0, %c0_1, %c0_2] : memref<1x1x8x48xbf16, #tpu.memory_space<vmem>>, vector<1x1x8x48xbf16>
    %1 = vector.shape_cast %0 : vector<1x1x8x48xbf16> to vector<8x48xbf16>
    %c0_3 = arith.constant 0 : index
    %c0_4 = arith.constant 0 : index
    %c0_5 = arith.constant 0 : index
    %2 = vector.load %arg3[%c0_3, %c0_4, %c0_5] : memref<1x48x128xbf16, #tpu.memory_space<vmem>>, vector<1x48x128xbf16>
    %3 = vector.shape_cast %2 : vector<1x48x128xbf16> to vector<48x128xbf16>
    %cst = arith.constant dense<0.000000e+00> : vector<8x128xf32>
    %4 = tpu.matmul %1, %3, %cst {dimension_numbers = #tpu.dot_dimension_numbers<[1], [0], [0], [1], [0, 0, 1, 1], [], []>} : vector<8x48xbf16>, vector<48x128xbf16>, vector<8x128xf32> -> vector<8x128xf32>
    %c0_6 = arith.constant 0 : index
    %c0_7 = arith.constant 0 : index
    %5 = vector.load %arg4[%c0_6, %c0_7] : memref<2x128xf32, #tpu.memory_space<vmem>>, vector<1x128xf32>
    %6 = vector.broadcast %5 : vector<1x128xf32> to vector<8x128xf32>
    %7 = arith.mulf %4, %6 : vector<8x128xf32>
    %c1 = arith.constant 1 : index
    %c0_8 = arith.constant 0 : index
    %8 = vector.load %arg4[%c1, %c0_8] : memref<2x128xf32, #tpu.memory_space<vmem>>, vector<1x128xf32>
    %9 = vector.broadcast %8 : vector<1x128xf32> to vector<8x128xf32>
    %10 = arith.addf %7, %9 : vector<8x128xf32>
    %cst_9 = arith.constant 0.000000e+00 : f32
    %11 = vector.broadcast %cst_9 : f32 to vector<8x128xf32>
    %12 = arith.cmpf oge, %10, %11 : vector<8x128xf32>
    %cst_10 = arith.constant 2.000000e-01 : f32
    %13 = vector.broadcast %cst_10 : f32 to vector<8x128xf32>
    %14 = arith.mulf %13, %10 : vector<8x128xf32>
    %15 = arith.select %12, %10, %14 : vector<8x128xi1>, vector<8x128xf32>
    %16 = arith.truncf %15 : vector<8x128xf32> to vector<8x128xbf16>
    %c0_11 = arith.constant 0 : index
    %c0_12 = arith.constant 0 : index
    %c0_13 = arith.constant 0 : index
    %c0_14 = arith.constant 0 : index
    %17 = vector.load %arg5[%c0_11, %c0_12, %c0_13, %c0_14] : memref<1x1x8x128xbf16, #tpu.memory_space<vmem>>, vector<1x1x8x128xbf16>
    %18 = vector.shape_cast %17 : vector<1x1x8x128xbf16> to vector<8x128xbf16>
    %19 = vector.shape_cast %16 : vector<8x128xbf16> to vector<1x1x8x128xbf16>
    tpu.vector_store %arg5[%c0_11, %c0_12, %c0_13, %c0_14], %19 {strides = array<i32>} : memref<1x1x8x128xbf16, #tpu.memory_space<vmem>>, vector<1x1x8x128xbf16>,
    return
  }
  func.func @transform_0(%arg0: i32, %arg1: i32) -> (i32, i32, i32, i32) {
    %c0_i32 = arith.constant 0 : i32
    %0 = arith.addi %arg1, %c0_i32 : i32
    %c0_i32_0 = arith.constant 0 : i32
    %c0_i32_1 = arith.constant 0 : i32
    %c0_i32_2 = arith.constant 0 : i32
    return %arg0, %0, %c0_i32_0, %c0_i32_1 : i32, i32, i32, i32
  }
  func.func @transform_1(%arg0: i32, %arg1: i32) -> (i32, i32, i32) {
    %c0_i32 = arith.constant 0 : i32
    %c0_i32_0 = arith.constant 0 : i32
    %c0_i32_1 = arith.constant 0 : i32
    %c0_i32_2 = arith.constant 0 : i32
    return %c0_i32, %c0_i32_0, %c0_i32_1 : i32, i32, i32
  }
  func.func @transform_2(%arg0: i32, %arg1: i32) -> (i32, i32) {
    %c0_i32 = arith.constant 0 : i32
    %c0_i32_0 = arith.constant 0 : i32
    %c0_i32_1 = arith.constant 0 : i32
    return %c0_i32, %c0_i32_0 : i32, i32
  }
  func.func @transform_3(%arg0: i32, %arg1: i32) -> (i32, i32, i32, i32) {
    %c0_i32 = arith.constant 0 : i32
    %c0_i32_0 = arith.constant 0 : i32
    %c0_i32_1 = arith.constant 0 : i32
    return %arg0, %arg1, %c0_i32, %c0_i32_0 : i32, i32, i32, i32
  }
}

</mosaic_0001>

<bundles_post_ra>
// kernel: tpu_custom_call.1
= control target key start
LH: loop header
LB: loop body
LE: loop exit
PB: predicated region body
PF: predicated region fallthrough
CT: control target
= control target key end

     0   :  { %s943_s0 = inlined_call_operand.hbm [shape: bf16[2,8,8,48], index: 0, kind: input, shape index: {}]   ;;  %s944_s1 = inlined_call_operand.hbm [shape: bf16[1,48,128], index: 1, kind: input, shape index: {}]   ;;  %s945_s2 = inlined_call_operand.hbm [shape: f32[2,128], index: 2, kind: input, shape index: {}]   ;;  %s946_s3 = inlined_call_operand.hbm [shape: bf16[2,8,8,128], index: 3, kind: output, shape index: {}]  }
   0x1   :  { %949 = sst [smem:[#allocation14_spill]] %s944_s1 }
   0x2   :  { %950 = sst [smem:[#allocation15_spill]] %s945_s2 }
   0x3   :  { %8 = vsyncpa [#allocation3], 0 }
   0x4   :  { %10 = vsyncpa [#allocation3 + $0x1], 0 }
   0x5   :  { %11 = vsyncpa [#allocation6], 0 }
   0x6   :  { %12 = vsyncpa [#allocation4], 0 }
   0x7   :  { %14 = vsyncpa [#allocation4 + $0x1], 0  ;;  %s769_s12 = smov 0   ;;  %s771_s13 = smov 0  }
   0x8   :  { %s773_s14 = smov 0   ;;  %s775_s15 = smov 0  }
   0x9   :  { %s777_s16 = smov 0   ;;  %s779_s17 = smov 0  }
   0xa   :  { %s781_s18 = smov 0   ;;  %s783_s19 = smov 0  }
   0xb LB: > { %s413_s20 = sadd.s32 4294967295, %s743_s19   ;;  %p415_p0 = scmp.ge.s32.totalorder %s743_s19, 1  ;;  %s743_s19 = sphi %s783_s19, %s20_s19   ;;  %s739_s18 = sphi %s781_s18, %s969_s18   ;;  %s735_s17 = sphi %s779_s17, %s968_s17   ;;  %s731_s16 = sphi %s777_s16, %s967_s16   ;;  %s727_s15 = sphi %s775_s15, %s966_s15   ;;  %s723_s14 = sphi %s773_s14, %s965_s14   ;;  %s719_s13 = sphi %s771_s13, %s964_s13   ;;  %s715_s12 = sphi %s769_s12, %s963_s12  }
   0xc   : > { %p813_p1 = scmp.eq.s32.totalorder %s413_s20, 0  ;;  %p135_p2 = scmp.lt.s32.totalorder %s743_s19, 17 }
   0xd   : > { %s952_s1 = sld [smem:[#allocation14_spill]]  ;;  %s745_s26 = smov [#allocation5]  }
   0xe   : > { %p821_p3 = pnand %p415_p0, %p135_p2  ;;  %s148_s27 = sshll.u32 %s745_s26, 4  ;;  %s149_s27 = int_to_ptr.vmem [resolvable:$true] %s148_s27 }
   0xf   : > { %s954_s2 = sld [smem:[#allocation15_spill]]  ;;  %s746_s4 = smov 64  }
  0x10   : > { %p460_p4 = pneg %p821_p3  ;;  %s747_s5 = smov 4  }
  0x11   : > { %s748_s6 = smov [#allocation7]   ;;  %s414_s8 = sadd.s32 4294967294, %s743_s19  }
  0x12   : > { %p461_p5 = pnand %p460_p4, %p813_p1  ;;  %s163_s7 = sshll.u32 %s748_s6, 4  ;;  %s164_s7 = int_to_ptr.vmem [resolvable:$true] %s163_s7 }
  0x13   : > { %s146_s24 = sshll.u32 %s952_s1, 4  ;;  %s29_s9 = sadd.s32 1, %s735_s17  ;;  %s147_s24 = int_to_ptr.hbm [resolvable:$true] %s146_s24 }
  0x14   : > { %463 = dma.hbm_to_vmem [thread:$0]  (!%p461_p5), %s147_s24, 384, %s149_s27, [#allocation6], %s746_s4, %s746_s4, %s747_s5  }
  0x15   : > { %s161_s30 = sshll.u32 %s954_s2, 4  ;;  %p30_p6 = scmp.ge.s32.totalorder %s29_s9, 8  ;;  %s162_s30 = int_to_ptr.hbm [resolvable:$true] %s161_s30 }
  0x16   : > { %466 = dma.hbm_to_vmem [thread:$0]  (!%p461_p5), %s162_s30, 32, %s164_s7, [#allocation6]  }
  0x17   : > { %s32_s10 = sadd.s32 1, %s739_s18  ;;  %s41_s11 = sadd.s32 1, %s723_s14 }
  0x18   : > { %p48_p7 = scmp.ne.s32.totalorder %s723_s14, %s719_s13  ;;  %s971_s9 = smov (%p30_p6, %s29_s9), 0 }
  0x19   : > { %955 = sst [smem:[#allocation12_spill]] %s971_s9  ;;  %s973_s10 = smov (!%p30_p6, %s32_s10), %s739_s18 }
  0x1a   : > { %s37_s22 = ssub.s32 %s735_s17, %s971_s9  ;;  %p49_p8 = scmp.eq.s32.totalorder %s743_s19, 0 }
  0x1b   : > { %p34_p9 = scmp.ge.s32.totalorder %s973_s10, 2  ;;  %p54_p10 = scmp.ne.s32.totalorder %s719_s13, %s715_s12 }
  0x1c   : > { %p846_p11 = por %p49_p8, %p48_p7  ;;  %p122_p12 = scmp.eq.s32.totalorder %s413_s20, 15 }
  0x1d   : > { %s975_s10 = smov (%p34_p9, %s973_s10), 0  ;;  %p856_p13 = por %p813_p1, %p54_p10 }
  0x1e   : > { %957 = sst [smem:[#allocation13_spill]] %s975_s10  ;;  %p860_p0 = por %p122_p12, %p48_p7 }
  0x1f   : > { %s36_s27 = ssub.s32 %s739_s18, %s975_s10  ;;  %p128_p2 = scmp.eq.s32.totalorder %s414_s8, 15 }
  0x20   : > { %s38_s28 = sor.u32 %s37_s22, %s36_s27  ;;  %p477_p4 = scmp.lt.s32.totalorder %s743_s19, 16 }
  0x21   : > { %p39_p5 = scmp.eq.s32.totalorder %s38_s28, 0  ;;  %p867_p6 = por %p128_p2, %p54_p10 }
  0x22   : > { %s174_s29 = sand.u32 1, %s723_s14   ;;  %s420_s30 = sshll.u32 %s739_s18, 3 }
  0x23   : > { %s874_s4 = scalar_select %p39_p5, %s723_s14, %s41_s11  }
  0x24   : > { %s419_s5 = sshll.u32 %s174_s29, 2  ;;  %s182_s6 = sadd.s32 %s735_s17, %s420_s30 }
  0x25   : > { %s421_s7 = sshll.u32 %s182_s6, 2  ;;  %s178_s1 = scalar_lea.vmem [#allocation2], %s419_s5 }
  0x26   : > { %s188_s2 = sshll.u32 %s178_s1, 4  ;;  %s184_s9 = scalar_lea.hbm %s943_s0, %s421_s7  ;;  %s189_s2 = int_to_ptr.vmem [resolvable:$true] %s188_s2 }
  0x27   : > { %s186_s22 = sshll.u32 %s184_s9, 4  ;;  %p468_p7 = pnand %p477_p4, %p846_p11  ;;  %s187_s22 = int_to_ptr.hbm [resolvable:$true] %s186_s22 }
  0x28   : > { %s175_s27 = scalar_lea.sflag [#allocation3], %s174_s29  ;;  %197 = sbr.rel (%p821_p3) target bundleno = 198 (0xc6), region = 32 }
  0x29   : > { %470 = dma.hbm_to_vmem [thread:$0]  (!%p468_p7), %s187_s22, 64, %s189_s2, %s175_s27  }
  0x2a   : > { %s887_s11 = sand.u32 (!%p821_p3), 1, %s719_s13  }
  0x2b   : > { %s423_s1 = sshll.u32 (!%p821_p3), %s887_s11, 2  ;;  %s200_s10 = scalar_lea.sflag (!%p821_p3), [#allocation3], %s887_s11 }
  0x2c   : > { %s203_s28 = scalar_lea.vmem (!%p821_p3), [#allocation2], %s423_s1 }
  0x2d   : > { %702 = dma.done.wait (%p856_p13), %s200_s10, 64  }
  0x2e   : > { %704 = vsyncadd (%p856_p13), %s200_s10, 4294967232 }
  0x2f   : > { %706 = dma.done.wait (%p813_p1), [#allocation6], 416  }
  0x30   : > { %708 = vsyncadd (%p813_p1), [#allocation6], 4294966880  ;;  %v447_v0 = vld [vmem:[#allocation5 + $0x10] sm:$0xff]  ;;  %v446_v1 = vld [vmem:[#allocation5 + $0x8] sm:$0xff]  ;;  %vm263_vm0 = vcmask 392192   ;;  %s441_s2 = sshll.u32 %s731_s16, 3 }
  0x31   : > { %272 = vmatpush.bf16.msra.mxu0 %v447_v0  ;;  %v445_v2 = vld [vmem:[#allocation5] sm:$0xff]  ;;  %v238_v3 = vld [vmem:[%s203_s28] sm:$0xf]  ;;  %s302_s25 = sadd.s32 %s727_s15, %s441_s2  ;;  %s236_s29 = scalar_lea.vmem [#allocation8], %s423_s1 }
  0x32   : > { %v549_v4 = vld [vmem:[#allocation7] ss:$0 sm:$0xff]  ;;  %v550_v5 = vld [vmem:[#allocation7 + $0x1] ss:$0 sm:$0xff]  ;;  %s442_s9 = sshll.u32 %s302_s25, 2  ;;  %s306_s30 = sshll.u32 %s236_s29, 4  ;;  %s307_s30 = int_to_ptr.vmem [resolvable:$true] %s306_s30 }
  0x33   : > { %s304_s24 = scalar_lea.hbm %s946_s3, %s442_s9  ;;  %s292_s15 = scalar_lea.sflag [#allocation4], %s887_s11 }
  0x34   : > { %s308_s5 = sshll.u32 %s304_s24, 4  ;;  %s661_s22 = scalar_lea.hbm %s946_s3, 64  ;;  %s309_s5 = int_to_ptr.hbm [resolvable:$true] %s308_s5 }
  0x35   : > { %273 = vmatpush.bf16.msra.mxu0 %v446_v1  ;;  %s655_s16 = sshra.s32 %s309_s5, 4  ;;  %s656_s16 = int_to_ptr.hbm [resolvable:$true] %s655_s16 }
  0x36   : > { %s657_s6 = scalar_lea.hbm %s656_s16, 4  ;;  %p662_p9 = scmp.lt.s32.totalorder %s656_s16, %s946_s3 }
  0x37   : > { %p658_p1 = scmp.ne.s32.totalorder %s656_s16, %s657_s6  ;;  %p663_p10 = scmp.lt.s32.totalorder %s661_s22, %s657_s6 }
  0x39   : > { %274 = vmatpush.bf16.msra.mxu0 %v445_v2  ;;  %p659_p3 = pnand %p658_p1, %p860_p0  ;;  %p664_p11 = por %p663_p10, %p662_p9 }
  0x3b   : > { %p660_p8 = pneg %p659_p3 }
  0x3c   : > { %439 = vmatmul.msk.bf16.vlgmr.msra.gmra.mxu0 %vm263_vm0, %v238_v3 }
  0x3d   : > { %p665_p12 = pnand %p664_p11, %p660_p8 }
  0xb9   : > { %v276_v6 = vpop.f32.mrf.mxu0 }
  0xba   : > { %v282_v7 = vmul.f32 %v549_v4, %v276_v6 }
  0xbc   : > { %v285_v8 = vadd.f32 %v550_v5, %v282_v7 }
  0xbe   : > { %vm286_vm1 = vcmp.ge.f32.partialorder %v285_v8, 0.0  ;;  %v287_v9 = vmul.f32 0.2, %v285_v8 }
  0xc0   : > { %v288_v10 = vsel %vm286_vm1, %v285_v8, %v287_v9 }
  0xc1   : > { %v289_v11 = vpack.c.bf16 %v288_v10, %v288_v10  ;;  %v278_v12 = vpop.f32.mrf.mxu0 }
  0xc3   : > { %290 = vst [vmem:[%s236_s29] sm:$0xf] %v289_v11 }
  0xc4   : > { %668 = shalt.err (!%p665_p12)
}
  0xc5   : > { %458 = dma.vmem_to_hbm [thread:$0]  (%p860_p0), %s307_s30, 64, %s309_s5, %s292_s15  }
  0xc6 PF: > { %p480_p13 = scmp.ge.s32.totalorder %s743_s19, 2  ;;  %s320_s11 = sand.u32 1, %s715_s12  }
  0xc7   : > { %s321_s10 = scalar_lea.sflag [#allocation4], %s320_s11 }
  0xc8   : > { %p472_p2 = pnand %p480_p13, %p867_p6 }
  0xca   : > { %p473_p4 = pneg %p472_p2 }
  0xcc   : > { %710 = dma.done.wait (%p473_p4), %s321_s10, 64  }
  0xcd   : > { %712 = vsyncadd (%p473_p4), %s321_s10, 4294967232  ;;  %s20_s19 = sadd.s32 1, %s743_s19   ;;  %s961_s26 = sld [smem:[#allocation12_spill]] }
  0xce   : > { %p17_p5 = scmp.ge.s32.totalorder %s20_s19, 18   ;;  %s962_s28 = sld [smem:[#allocation13_spill]] }
  0xcf   : > { %s963_s12 = smov %s719_s13  ;;  %s964_s13 = smov %s723_s14 }
  0xd0   : > { %s965_s14 = smov %s874_s4  ;;  %s966_s15 = smov %s735_s17 }
  0xd1   : > { %s967_s16 = smov %s739_s18  ;;  %19 = sbr.rel (!%p17_p5) target bundleno = 11 (0xb), region = 85 }
  0xd3   : > { %s968_s17 = smov %s961_s26 }
  0xd4   : > { %s969_s18 = smov %s962_s28 }
  0xd6   :  { %327 = vsyncpa [#allocation3], 1 }
  0xd7   :  { %329 = vsyncpa [#allocation3 + $0x1], 1 }
  0xd8   :  { %330 = vsyncpa [#allocation6], 1 }
  0xd9   :  { %331 = vsyncpa [#allocation4], 1 }
  0xda   :  { %333 = vsyncpa [#allocation4 + $0x1], 1 }

</bundles_post_ra>
